<compile_context>
chip_gen: v7x
topology: tpu7x:2x2x1
jax: 0.10.0
libtpu: 0.0.40
codegen_flags: <defaults>
</compile_context>

<pallas_src>
import functools

import jax
import jax.numpy as jnp
from jax.experimental import pallas as pl
from jax.experimental.pallas import tpu as pltpu

_LANES = 128
_SUBLANES = 8
# 4096 rows * 128 lanes * 4 B = 2 MiB per input block. With two inputs and
# double buffering this is 8 MiB of VMEM — safe on v5e/v6e/v7x while being
# large enough to amortize the ~0.35 us/grid-step overhead (>=85% of HBM
# roofline per the tiled-add measurements).
_MAX_BLOCK_ROWS = 4096


def _ssd_kernel(a_ref, b_ref, out_ref, *, block_rows, rows_valid,
                steps_per_core, apply_mask):
    """Accumulate per-core partial sums of (a - b)**2 into an (8,128) block."""
    c = pl.program_id(0)   # core-split axis ("parallel")
    i = pl.program_id(1)   # sequential reduction axis ("arbitrary")

    @pl.when(i == 0)
    def _init():
        out_ref[...] = jnp.zeros_like(out_ref)

    d = a_ref[...].astype(jnp.float32) - b_ref[...].astype(jnp.float32)
    sq = d * d

    if apply_mask:
        # Mask rows beyond the valid extent: covers the ragged final block and
        # any clamped/duplicated block from the 2-core split. Pure VPU ops,
        # negligible next to the HBM-bound loads.
        row0 = (c * steps_per_core + i) * block_rows
        row_idx = row0 + jax.lax.broadcasted_iota(jnp.int32, sq.shape, 0)
        sq = jnp.where(row_idx < rows_valid, sq, jnp.float32(0.0))

    # Fold the block down to (8, 128) with vreg adds and accumulate into the
    # resident output block. The cross-lane reduce happens once, outside.
    out_ref[...] += sq.reshape(block_rows // _SUBLANES, _SUBLANES, _LANES).sum(axis=0)


def _sum_sq_diff(a, b):
    """sum((a - b)**2) over all elements, computed in a Pallas kernel."""
    n = a.size
    flat_a = a.reshape(-1)
    flat_b = b.reshape(-1)

    chunk = _SUBLANES * _LANES  # 1024
    rem = n % chunk
    if rem:
        # Rare fallback (size not a multiple of 1024): pad both operands with
        # zeros, which contribute (0-0)^2 = 0 to the sum. The common
        # power-of-two NCHW case pays no pad/copy at all.
        pad = chunk - rem
        flat_a = jnp.pad(flat_a, (0, pad))
        flat_b = jnp.pad(flat_b, (0, pad))

    rows = flat_a.shape[0] // _LANES   # multiple of 8
    a2 = flat_a.reshape(rows, _LANES)  # free reshape for contiguous arrays
    b2 = flat_b.reshape(rows, _LANES)

    block_rows = min(_MAX_BLOCK_ROWS, rows)          # multiple of 8
    total_blocks = pl.cdiv(rows, block_rows)
    n_split = min(2, total_blocks)                   # v7x: use both TensorCores
    steps = pl.cdiv(total_blocks, n_split)
    apply_mask = (n_split * steps * block_rows) != rows

    kernel = functools.partial(
        _ssd_kernel,
        block_rows=block_rows,
        rows_valid=rows,
        steps_per_core=steps,
        apply_mask=apply_mask,
    )

    def in_map(c, i):
        blk = c * steps + i
        # Clamp any past-the-end block of the core split back in range; its
        # contribution is zeroed by the in-kernel mask.
        return (jnp.minimum(blk, total_blocks - 1), 0)

    bytes_accessed = (
        a2.size * a2.dtype.itemsize
        + b2.size * b2.dtype.itemsize
        + n_split * _SUBLANES * _LANES * 4
    )

    partials = pl.pallas_call(
        kernel,
        out_shape=jax.ShapeDtypeStruct((n_split * _SUBLANES, _LANES), jnp.float32),
        grid_spec=pltpu.PrefetchScalarGridSpec(
            num_scalar_prefetch=0,
            grid=(n_split, steps),
            in_specs=[
                pl.BlockSpec((block_rows, _LANES), in_map),
                pl.BlockSpec((block_rows, _LANES), in_map),
            ],
            out_specs=pl.BlockSpec((_SUBLANES, _LANES), lambda c, i: (c, 0)),
        ),
        compiler_params=pltpu.CompilerParams(
            dimension_semantics=("parallel", "arbitrary"),
            vmem_limit_bytes=32 * 1024 * 1024,
        ),
        cost_estimate=pl.CostEstimate(
            flops=3 * n,
            transcendentals=0,
            bytes_accessed=bytes_accessed,
        ),
    )(a2, b2)

    # Single cheap cross-lane/sublane reduction of the per-core partials,
    # fused into the scalar epilogue by XLA.
    return jnp.sum(partials)


@jax.jit
def _rmsd_impl(predictions, targets, model_parameters, l2_penalty):
    n = predictions.size
    ssd = _sum_sq_diff(predictions, targets)
    loss = jnp.sqrt(ssd / jnp.float32(n))
    if model_parameters:
        # Parameter tensors are typically small: a plain fused XLA reduction is
        # faster than per-parameter kernel launches and avoids materialized
        # intermediates.
        l2 = jnp.float32(0.0)
        for p in model_parameters:
            l2 = l2 + jnp.sum(p.astype(jnp.float32) ** 2)
        loss = loss + l2_penalty * l2
    return loss


def rmsd_loss(predictions, targets, model_parameters=None, l2_penalty=0.01):
    """Pallas-backed equivalent of RMSDLoss.forward."""
    params = tuple(model_parameters) if model_parameters is not None else ()
    return _rmsd_impl(predictions, targets, params, jnp.float32(l2_penalty))


if __name__ == "__main__":
    key = jax.random.PRNGKey(0)
    k1, k2, k3, k4 = jax.random.split(key, 4)

    # Small NCHW-like tensors: batch=2, channels=4, spatial=16x16.
    predictions = jax.random.normal(k1, (2, 4, 16, 16), dtype=jnp.float32)
    targets = jax.random.normal(k2, (2, 4, 16, 16), dtype=jnp.float32)

    # Deterministic synthetic "model parameters" for the L2 branch.
    params = [
        jax.random.normal(k3, (4, 32), dtype=jnp.float32),
        jax.random.normal(k4, (32,), dtype=jnp.float32),
    ]

    # Plain-JAX reference.
    ref = jnp.sqrt(jnp.mean((predictions - targets) ** 2))
    ref = ref + 0.01 * sum(jnp.sum(p ** 2) for p in params)

    out = rmsd_loss(predictions, targets, params, l2_penalty=0.01)
    out = jax.block_until_ready(out)
    assert jnp.allclose(out, ref, rtol=1e-5, atol=1e-5), (out, ref)

    # No-parameters path.
    out2 = jax.block_until_ready(rmsd_loss(predictions, targets))
    ref2 = jnp.sqrt(jnp.mean((predictions - targets) ** 2))
    assert jnp.allclose(out2, ref2, rtol=1e-5, atol=1e-5), (out2, ref2)

    # Larger, non-multiple-of-block shape to exercise the padded / masked path.
    k5, k6 = jax.random.split(k1)
    big_a = jax.random.normal(k5, (3, 5, 33, 47), dtype=jnp.float32)
    big_b = jax.random.normal(k6, (3, 5, 33, 47), dtype=jnp.float32)
    out3 = jax.block_until_ready(rmsd_loss(big_a, big_b))
    ref3 = jnp.sqrt(jnp.mean((big_a - big_b) ** 2))
    assert jnp.allclose(out3, ref3, rtol=1e-5, atol=1e-5), (out3, ref3)

    print("KERNEL_OK")
</pallas_src>

<mosaic_0001>
module attributes {stable_mosaic.version = 11 : i64} {
  func.func @_ssd_kernel(%arg0: i32, %arg1: i32, %arg2: memref<16x128xf32, #tpu.memory_space<vmem>>, %arg3: memref<16x128xf32, #tpu.memory_space<vmem>>, %arg4: memref<8x128xf32, #tpu.memory_space<vmem>>) attributes {dimension_semantics = [#tpu.dimension_semantics<parallel>, #tpu.dimension_semantics<arbitrary>], iteration_bounds = array<i64: 1, 1>, scalar_prefetch = 0 : i64, scratch_operands = 0 : i64, tpu.core_type = #tpu.core_type<tc>, window_params = [{transform_indices = @transform_0, window_bounds = array<i64: 16, 128>}, {transform_indices = @transform_1, window_bounds = array<i64: 16, 128>}, {transform_indices = @transform_2, window_bounds = array<i64: 8, 128>}]} {
    %c0_i32 = arith.constant 0 : i32
    %0 = arith.cmpi eq, %arg1, %c0_i32 : i32
    %1 = arith.extui %0 : i1 to i32
    %c0_i32_0 = arith.constant 0 : i32
    %2 = arith.cmpi ne, %1, %c0_i32_0 : i32
    scf.if %2 {
      %cst_8 = arith.constant 0.000000e+00 : f32
      %12 = vector.broadcast %cst_8 : f32 to vector<8x128xf32>
      %c0_9 = arith.constant 0 : index
      %c0_10 = arith.constant 0 : index
      %13 = vector.load %arg4[%c0_9, %c0_10] : memref<8x128xf32, #tpu.memory_space<vmem>>, vector<8x128xf32>
      tpu.vector_store %arg4[%c0_9, %c0_10], %12 {strides = array<i32>} : memref<8x128xf32, #tpu.memory_space<vmem>>, vector<8x128xf32>,
    } else {
    }
    %c0 = arith.constant 0 : index
    %c0_1 = arith.constant 0 : index
    %3 = vector.load %arg2[%c0, %c0_1] : memref<16x128xf32, #tpu.memory_space<vmem>>, vector<16x128xf32>
    %c0_2 = arith.constant 0 : index
    %c0_3 = arith.constant 0 : index
    %4 = vector.load %arg3[%c0_2, %c0_3] : memref<16x128xf32, #tpu.memory_space<vmem>>, vector<16x128xf32>
    %5 = arith.subf %3, %4 : vector<16x128xf32>
    %6 = arith.mulf %5, %5 : vector<16x128xf32>
    %c0_4 = arith.constant 0 : index
    %c0_5 = arith.constant 0 : index
    %7 = vector.load %arg4[%c0_4, %c0_5] : memref<8x128xf32, #tpu.memory_space<vmem>>, vector<8x128xf32>
    %8 = vector.shape_cast %6 : vector<16x128xf32> to vector<2x8x128xf32>
    %cst = arith.constant dense<0.000000e+00> : vector<8x128xf32>
    %9 = vector.multi_reduction <add>, %8, %cst [0] : vector<2x8x128xf32> to vector<8x128xf32>
    %10 = arith.addf %7, %9 : vector<8x128xf32>
    %c0_6 = arith.constant 0 : index
    %c0_7 = arith.constant 0 : index
    %11 = vector.load %arg4[%c0_6, %c0_7] : memref<8x128xf32, #tpu.memory_space<vmem>>, vector<8x128xf32>
    tpu.vector_store %arg4[%c0_6, %c0_7], %10 {strides = array<i32>} : memref<8x128xf32, #tpu.memory_space<vmem>>, vector<8x128xf32>,
    return
  }
  func.func @transform_0(%arg0: i32, %arg1: i32) -> (i32, i32) {
    %c1_i32 = arith.constant 1 : i32
    %0 = arith.muli %arg0, %c1_i32 : i32
    %1 = arith.addi %0, %arg1 : i32
    %c0_i32 = arith.constant 0 : i32
    %2 = arith.minsi %1, %c0_i32 : i32
    %c0_i32_0 = arith.constant 0 : i32
    %c0_i32_1 = arith.constant 0 : i32
    return %2, %c0_i32_0 : i32, i32
  }
  func.func @transform_1(%arg0: i32, %arg1: i32) -> (i32, i32) {
    %c1_i32 = arith.constant 1 : i32
    %0 = arith.muli %arg0, %c1_i32 : i32
    %1 = arith.addi %0, %arg1 : i32
    %c0_i32 = arith.constant 0 : i32
    %2 = arith.minsi %1, %c0_i32 : i32
    %c0_i32_0 = arith.constant 0 : i32
    %c0_i32_1 = arith.constant 0 : i32
    return %2, %c0_i32_0 : i32, i32
  }
  func.func @transform_2(%arg0: i32, %arg1: i32) -> (i32, i32) {
    %c0_i32 = arith.constant 0 : i32
    %c0_i32_0 = arith.constant 0 : i32
    return %arg0, %c0_i32 : i32, i32
  }
}

</mosaic_0001>

<bundles_post_ra>
// kernel: _rmsd_impl.1
= control target key start
LH: loop header
LB: loop body
LE: loop exit
PB: predicated region body
PF: predicated region fallthrough
CT: control target
= control target key end

     0   :  { %s139_s0 = inlined_call_operand.vmem [shape: f32[16,128], index: 0, kind: input, shape index: {}]   ;;  %s140_s1 = inlined_call_operand.vmem [shape: f32[16,128], index: 1, kind: input, shape index: {}]   ;;  %s141_s2 = inlined_call_operand.vmem [shape: f32[8,128], index: 2, kind: output, shape index: {}]  }
   0x1   :  { %v80_v0 = vld [vmem:[%s139_s0] sm:$0xff]  ;;  %v81_v1 = vld [vmem:[%s139_s0 + $0x8] sm:$0xff] }
   0x2   :  { %v82_v2 = vld [vmem:[%s140_s1] sm:$0xff]  ;;  %v83_v3 = vld [vmem:[%s140_s1 + $0x8] sm:$0xff] }
   0x3   :  { %v84_v4 = vsub.f32 %v80_v0, %v82_v2  ;;  %v85_v5 = vsub.f32 %v81_v1, %v83_v3 }
   0x5   :  { %v86_v6 = vmul.f32 %v84_v4, %v84_v4  ;;  %v87_v7 = vmul.f32 %v85_v5, %v85_v5 }
   0x7   :  { %v89_v8 = vadd.f32 %v87_v7, %v86_v6 }
   0x9   :  { %91 = vst [vmem:[%s141_s2] sm:$0xff] %v89_v8 }

</bundles_post_ra>
